<compile_context>
chip_gen: v6e
topology: v6e:2x2x1
jax: 0.10.0
libtpu: 0.0.40
codegen_flags: <defaults>
</compile_context>

<pallas_src>
import jax
import jax.numpy as jnp
from jax.experimental import pallas as pl
from jax.experimental.pallas import tpu as pltpu


_EPS = 1e-5


def _round_up(x, m):
    return ((x + m - 1) // m) * m


def _dot(a, b):
    return jnp.dot(a, b, preferred_element_type=jnp.float32)


# ----------------------------------------------------------------------------
# Fully fused LGNet forward kernel (builder closes over static shape metadata)
# ----------------------------------------------------------------------------
def _build_lgnet_kernel(node_counts, in_feats, h_feats, num_lgcn):
    """Whole LGNet forward in one pallas_call.

    Packed input refs:
      ah_ref   [G, n_max, n_max]        normalized adjacencies (zero padded)
      inc_ref  [G-1, n_max, n_max]      incidence 'in' matrices
      inct_ref [G-1, n_max, n_max]      transposed incidence matrices
      h0_ref   [G, n_max, in_feats]     initial node features
      w_ref    [L*3*2, fin_max, F]      wc/wf per (layer, core); index = (l*3+c)*2+k
      v_ref    [L*3, 8, F]              rows: [b_conv, b_fus, conv_w, topDown_w, bottomUp_w, 0, 0, 0]
      wout_ref [F, out_pad]             output Linear weight (transposed, lane padded)
      bout_ref [1, out_pad]             output Linear bias (lane padded)
      out_ref  [1, out_pad]
    """
    G = len(node_counts)
    F = h_feats
    half = F // 2  # TODO(synk): reference's `out_feats // 2` split assumes an even width.

    def kernel(ah_ref, inc_ref, inct_ref, h0_ref, w_ref, v_ref,
               wout_ref, bout_ref, out_ref):
        # ------ constants built once (hoisted out of every half-ReLU call) ------
        relu_mask = jax.lax.broadcasted_iota(jnp.int32, (1, F), 1) >= half

        def half_relu(x):
            # cat([x[:, :half], relu(x[:, half:])], 1)
            return jnp.where(relu_mask, jnp.maximum(x, 0.0), x)

        def layer_norm(x):
            # LayerNorm over feature dim: weight=1, bias=0, eps=1e-5, biased var.
            mu = jnp.mean(x, axis=-1, keepdims=True)
            ms = jnp.mean(x * x, axis=-1, keepdims=True)
            var = jnp.maximum(ms - mu * mu, 0.0)
            return (x - mu) * jax.lax.rsqrt(var + _EPS)

        def batch_norm(x):
            # BatchNorm1d training mode: batch stats, biased var, weight=1, bias=0.
            mu = jnp.mean(x, axis=0, keepdims=True)
            ms = jnp.mean(x * x, axis=0, keepdims=True)
            var = jnp.maximum(ms - mu * mu, 0.0)
            return (x - mu) * jax.lax.rsqrt(var + _EPS)

        h = None  # carried per-graph node features (jnp arrays after layer 0)

        for l in range(num_lgcn):
            fin = in_feats if l == 0 else F

            # current layer inputs: lazy-load initial features only for layer 0
            if h is None:
                cur = [h0_ref[i][:node_counts[i], :] for i in range(G)]
            else:
                cur = h

            def core_rhs_bias(c, kind, _l=l, _fin=fin):
                """Pre-scaled, K-stacked RHS and fused bias for core c of layer _l.

                Exact fusion:  (Ahat@(X@Wc)+bc)*sc + (Ahat@(L@Wf)+bf)*s
                            =  Ahat@([X|L]@[Wc*sc; Wf*s]) + bc*sc + bf*s
                (conv_w / topDown_w / bottomUp_w are per-output-column scales).
                """
                base = (_l * 3 + c) * 2
                wc = w_ref[base][:_fin, :]
                wf = w_ref[base + 1][:_fin, :]
                v = v_ref[_l * 3 + c]
                bc, bf = v[0:1], v[1:2]
                sc, s_td, s_bu = v[2:3], v[3:4], v[4:5]
                if kind == "td":
                    return (jnp.concatenate([wc * sc, wf * s_td], axis=0),
                            bc * sc + bf * s_td)
                if kind == "bu":
                    return (jnp.concatenate([wc * sc, wf * s_bu], axis=0),
                            bc * sc + bf * s_bu)
                return (jnp.concatenate([wc * sc, wf * s_bu, wf * s_td], axis=0),
                        bc * sc + bf * (s_bu + s_td))

            # 'both' core is shared by every interior graph -> build once per layer.
            if G > 2:
                rhs_both, bias_both = core_rhs_bias(2, "both")

            new_h = []
            for i in range(G):
                n_i = node_counts[i]
                if i == 0:
                    # top_down: feats = [curr, next], inc = [g_inc]
                    rhs, bias = core_rhs_bias(0, "td")
                    lift_td = _dot(inc_ref[0][:n_i, :node_counts[1]], cur[1])
                    lhs = jnp.concatenate([cur[0], lift_td], axis=-1)
                elif i == G - 1:
                    # bottom_up: feats = [curr, prev], inc = [prev_inc^T]
                    rhs, bias = core_rhs_bias(1, "bu")
                    lift_bu = _dot(inct_ref[i - 1][:n_i, :node_counts[i - 1]],
                                   cur[i - 1])
                    lhs = jnp.concatenate([cur[i], lift_bu], axis=-1)
                else:
                    # both: feats = [curr, prev, next], inc = [curr_inc, prev_inc^T]
                    rhs, bias = rhs_both, bias_both
                    lift_bu = _dot(inct_ref[i - 1][:n_i, :node_counts[i - 1]],
                                   cur[i - 1])
                    lift_td = _dot(inc_ref[i][:n_i, :node_counts[i + 1]],
                                   cur[i + 1])
                    lhs = jnp.concatenate([cur[i], lift_bu, lift_td], axis=-1)

                z = _dot(lhs, rhs)                         # single fused K-stacked matmul
                res = _dot(ah_ref[i][:n_i, :n_i], z) + bias  # one Ahat matmul per graph
                res = batch_norm(half_relu(layer_norm(res)))
                new_h.append(res)
            h = new_h

        # dgl.mean_nodes over graph 0 (single-graph readout) + output Linear, fused.
        readout = jnp.mean(h[0], axis=0, keepdims=True)        # [1, F]
        out_ref[...] = _dot(readout, wout_ref[...]) + bout_ref[...]

    return kernel


def make_lgnet_forward(node_counts, in_feats, h_feats, out_feats, num_lgcn):
    node_counts = tuple(int(n) for n in node_counts)
    out_pad = _round_up(out_feats, 128)
    kernel = _build_lgnet_kernel(node_counts, in_feats, h_feats, num_lgcn)
    vmem = pl.BlockSpec(memory_space=pltpu.MemorySpace.VMEM)

    @jax.jit
    def forward(ah, inc, inct, h0, w_all, v_all, w_out, b_out):
        out = pl.pallas_call(
            kernel,
            out_shape=jax.ShapeDtypeStruct((1, out_pad), jnp.float32),
            in_specs=[vmem] * 8,
            out_specs=vmem,
            compiler_params=pltpu.CompilerParams(
                vmem_limit_bytes=32 * 1024 * 1024),
        )(ah, inc, inct, h0, w_all, v_all, w_out, b_out)
        return out[:, :out_feats]   # slice lane-padded output back to out_feats

    return forward


# ----------------------------------------------------------------------------
# Host-side input packing (done ONCE, outside the jitted forward)
# ----------------------------------------------------------------------------
def pack_lgnet_inputs(net_params, ahats, incs, lg_h, in_feats, h_feats, out_feats):
    G = len(lg_h)
    F = h_feats
    fin_max = _round_up(max(in_feats, F), 8)
    n_max = _round_up(max(int(a.shape[0]) for a in ahats), 8)
    out_pad = _round_up(out_feats, 128)

    def pad2(x, r, c):
        return jnp.pad(x, ((0, r - x.shape[0]), (0, c - x.shape[1])))

    ah = jnp.stack([pad2(a, n_max, n_max) for a in ahats])
    inc = jnp.stack([pad2(m, n_max, n_max) for m in incs])
    inct = jnp.stack([pad2(jnp.transpose(m), n_max, n_max) for m in incs])
    h0 = jnp.stack([pad2(x, n_max, in_feats) for x in lg_h])

    w_list, v_list = [], []
    for lp in net_params["layers"]:
        for name in ("top_down", "bottom_up", "both"):
            core = lp[name]
            w_list.append(pad2(core["wc"], fin_max, F))
            w_list.append(pad2(core["wf"], fin_max, F))
            v_list.append(pad2(core["v"], 8, F))
    w_all = jnp.stack(w_list)   # [L*3*2, fin_max, F]
    v_all = jnp.stack(v_list)   # [L*3, 8, F]

    w_out = pad2(net_params["w_out_t"], F, out_pad)
    b_out = pad2(net_params["b_out"], 1, out_pad)
    return ah, inc, inct, h0, w_all, v_all, w_out, b_out


# ----------------------------------------------------------------------------
# Model glue (parameter init, graph preprocessing)
# ----------------------------------------------------------------------------
def graphconv_norm_adj(adj):
    """DGL GraphConv (norm='both') aggregation matrix, with self-loops added."""
    n = adj.shape[0]
    a_sl = adj + jnp.eye(n, dtype=jnp.float32)
    deg_out = jnp.sum(a_sl, axis=1)   # out-degree of source nodes
    deg_in = jnp.sum(a_sl, axis=0)    # in-degree of destination nodes
    # rst = D_in^{-1/2} A^T D_out^{-1/2} x
    return (deg_in[:, None] ** -0.5) * a_sl.T * (deg_out[None, :] ** -0.5)


def init_lgcore_params(key, in_feats, out_feats):
    ks = jax.random.split(key, 5)
    lim = (6.0 / (in_feats + out_feats)) ** 0.5  # xavier_uniform (DGL GraphConv)
    wc = jax.random.uniform(ks[0], (in_feats, out_feats), jnp.float32, -lim, lim)
    wf = jax.random.uniform(ks[1], (in_feats, out_feats), jnp.float32, -lim, lim)
    # v rows: [b_conv (zeros), b_fus (zeros), conv_w, topDown_w, bottomUp_w]
    v = jnp.concatenate(
        [jnp.zeros((2, out_feats), jnp.float32),
         jax.random.uniform(ks[2], (1, out_feats), jnp.float32),   # torch.rand
         jax.random.uniform(ks[3], (1, out_feats), jnp.float32),
         jax.random.uniform(ks[4], (1, out_feats), jnp.float32)],
        axis=0)
    return dict(wc=wc, wf=wf, v=v)
    # TODO(synk): LGCore.gat_conv / LGCore.lin are dead code in forward (commented out) -> not instantiated.


def init_lgcn_params(key, in_feats, out_feats):
    k0, k1, k2 = jax.random.split(key, 3)
    return dict(
        top_down=init_lgcore_params(k0, in_feats, out_feats),
        bottom_up=init_lgcore_params(k1, in_feats, out_feats),
        both=init_lgcore_params(k2, in_feats, out_feats),
    )


def init_lgnet_params(key, in_feats, h_feats, out_feats, num_layers):
    keys = jax.random.split(key, num_layers + 2)
    layers = []
    for layer in range(num_layers - 1):
        fin = in_feats if layer == 0 else h_feats
        layers.append(init_lgcn_params(keys[layer], fin, h_feats))
    bound = 1.0 / (h_feats ** 0.5)
    w_out_t = jax.random.uniform(keys[-1], (h_feats, out_feats), jnp.float32,
                                 -bound, bound)
    b_out = jax.random.uniform(keys[-2], (1, out_feats), jnp.float32,
                               -bound, bound)
    # TODO(synk): LGNet.batch_norms are instantiated but never applied in forward -> omitted.
    return dict(layers=layers, w_out_t=w_out_t, b_out=b_out)


# ----------------------------------------------------------------------------
# Main
# ----------------------------------------------------------------------------
if __name__ == "__main__":
    key = jax.random.PRNGKey(0)

    # Line-graph hierarchy: 3 graphs; nodes of graph i+1 correspond to edges of graph i.
    node_counts = [8, 12, 10]
    in_feats, h_feats, out_feats, num_layers = 16, 32, 8, 3

    keys = jax.random.split(key, 16)

    # Synthetic adjacency matrices (no self loops; GraphConv adds them).
    ahats = []
    for idx, n in enumerate(node_counts):
        a = (jax.random.uniform(keys[idx], (n, n)) > 0.6).astype(jnp.float32)
        a = a * (1.0 - jnp.eye(n, dtype=jnp.float32))
        ahats.append(graphconv_norm_adj(a))
    ahats = tuple(ahats)

    # 'in' incidence matrices: shape (N_i, N_{i+1}); each edge has one destination.
    incs = []
    for i in range(len(node_counts) - 1):
        dst = jax.random.randint(keys[4 + i], (node_counts[i + 1],), 0, node_counts[i])
        incs.append(jax.nn.one_hot(dst, node_counts[i], dtype=jnp.float32).T)
    incs = tuple(incs)

    # Node features per graph.
    lg_h = tuple(
        jax.random.normal(keys[8 + i], (node_counts[i], in_feats), jnp.float32)
        for i in range(len(node_counts))
    )

    net_params = init_lgnet_params(keys[15], in_feats, h_feats, out_feats, num_layers)

    packed = pack_lgnet_inputs(net_params, ahats, incs, lg_h,
                               in_feats, h_feats, out_feats)
    lgnet_forward = make_lgnet_forward(node_counts, in_feats, h_feats,
                                       out_feats, num_layers - 1)

    out = lgnet_forward(*packed)
    jax.block_until_ready(out)
    assert out.shape == (1, out_feats)
    print("KERNEL_OK")
</pallas_src>

<mosaic_0001>
module attributes {stable_mosaic.version = 11 : i64} {
  func.func @kernel(%arg0: memref<3x16x16xf32, #tpu.memory_space<vmem>>, %arg1: memref<2x16x16xf32, #tpu.memory_space<vmem>>, %arg2: memref<2x16x16xf32, #tpu.memory_space<vmem>>, %arg3: memref<3x16x16xf32, #tpu.memory_space<vmem>>, %arg4: memref<12x32x32xf32, #tpu.memory_space<vmem>>, %arg5: memref<6x8x32xf32, #tpu.memory_space<vmem>>, %arg6: memref<32x128xf32, #tpu.memory_space<vmem>>, %arg7: memref<1x128xf32, #tpu.memory_space<vmem>>, %arg8: memref<1x128xf32, #tpu.memory_space<vmem>>) attributes {dimension_semantics = [], scalar_prefetch = 0 : i64, scratch_operands = 0 : i64, tpu.core_type = #tpu.core_type<tc>} {
    %0 = tpu.iota {dimensions = array<i32: 1>} : vector<1x32xi32>
    %c16_i32 = arith.constant 16 : i32
    %1 = vector.broadcast %c16_i32 : i32 to vector<1x32xi32>
    %2 = arith.cmpi sge, %0, %1 : vector<1x32xi32>
    %c0 = arith.constant 0 : index
    %c0_0 = arith.constant 0 : index
    %c0_1 = arith.constant 0 : index
    %3 = vector.load %arg3[%c0, %c0_0, %c0_1] : memref<3x16x16xf32, #tpu.memory_space<vmem>>, vector<1x16x16xf32>
    %4 = vector.shape_cast %3 : vector<1x16x16xf32> to vector<16x16xf32>
    %5 = vector.extract_strided_slice %4 {offsets = [0, 0], sizes = [8, 16], strides = [1, 1]} : vector<16x16xf32> to vector<8x16xf32>
    %c1 = arith.constant 1 : index
    %c0_2 = arith.constant 0 : index
    %c0_3 = arith.constant 0 : index
    %6 = vector.load %arg3[%c1, %c0_2, %c0_3] : memref<3x16x16xf32, #tpu.memory_space<vmem>>, vector<1x16x16xf32>
    %7 = vector.shape_cast %6 : vector<1x16x16xf32> to vector<16x16xf32>
    %8 = vector.extract_strided_slice %7 {offsets = [0, 0], sizes = [12, 16], strides = [1, 1]} : vector<16x16xf32> to vector<12x16xf32>
    %c2 = arith.constant 2 : index
    %c0_4 = arith.constant 0 : index
    %c0_5 = arith.constant 0 : index
    %9 = vector.load %arg3[%c2, %c0_4, %c0_5] : memref<3x16x16xf32, #tpu.memory_space<vmem>>, vector<1x16x16xf32>
    %10 = vector.shape_cast %9 : vector<1x16x16xf32> to vector<16x16xf32>
    %11 = vector.extract_strided_slice %10 {offsets = [0, 0], sizes = [10, 16], strides = [1, 1]} : vector<16x16xf32> to vector<10x16xf32>
    %c4 = arith.constant 4 : index
    %c0_6 = arith.constant 0 : index
    %c0_7 = arith.constant 0 : index
    %12 = vector.load %arg4[%c4, %c0_6, %c0_7] : memref<12x32x32xf32, #tpu.memory_space<vmem>>, vector<1x32x32xf32>
    %13 = vector.shape_cast %12 : vector<1x32x32xf32> to vector<32x32xf32>
    %14 = vector.extract_strided_slice %13 {offsets = [0, 0], sizes = [16, 32], strides = [1, 1]} : vector<32x32xf32> to vector<16x32xf32>
    %c5 = arith.constant 5 : index
    %c0_8 = arith.constant 0 : index
    %c0_9 = arith.constant 0 : index
    %15 = vector.load %arg4[%c5, %c0_8, %c0_9] : memref<12x32x32xf32, #tpu.memory_space<vmem>>, vector<1x32x32xf32>
    %16 = vector.shape_cast %15 : vector<1x32x32xf32> to vector<32x32xf32>
    %17 = vector.extract_strided_slice %16 {offsets = [0, 0], sizes = [16, 32], strides = [1, 1]} : vector<32x32xf32> to vector<16x32xf32>
    %c2_10 = arith.constant 2 : index
    %c0_11 = arith.constant 0 : index
    %c0_12 = arith.constant 0 : index
    %18 = vector.load %arg5[%c2_10, %c0_11, %c0_12] : memref<6x8x32xf32, #tpu.memory_space<vmem>>, vector<1x8x32xf32>
    %19 = vector.shape_cast %18 : vector<1x8x32xf32> to vector<8x32xf32>
    %20 = vector.extract_strided_slice %19 {offsets = [0, 0], sizes = [1, 32], strides = [1, 1]} : vector<8x32xf32> to vector<1x32xf32>
    %21 = vector.extract_strided_slice %19 {offsets = [1, 0], sizes = [1, 32], strides = [1, 1]} : vector<8x32xf32> to vector<1x32xf32>
    %22 = vector.extract_strided_slice %19 {offsets = [2, 0], sizes = [1, 32], strides = [1, 1]} : vector<8x32xf32> to vector<1x32xf32>
    %23 = vector.extract_strided_slice %19 {offsets = [3, 0], sizes = [1, 32], strides = [1, 1]} : vector<8x32xf32> to vector<1x32xf32>
    %24 = vector.extract_strided_slice %19 {offsets = [4, 0], sizes = [1, 32], strides = [1, 1]} : vector<8x32xf32> to vector<1x32xf32>
    %25 = vector.broadcast %22 : vector<1x32xf32> to vector<16x32xf32>
    %26 = arith.mulf %14, %25 : vector<16x32xf32>
    %27 = vector.broadcast %24 : vector<1x32xf32> to vector<16x32xf32>
    %28 = arith.mulf %17, %27 : vector<16x32xf32>
    %29 = vector.broadcast %23 : vector<1x32xf32> to vector<16x32xf32>
    %30 = arith.mulf %17, %29 : vector<16x32xf32>
    %31 = tpu.concatenate %26, %28, %30 in 0 : vector<16x32xf32>, vector<16x32xf32>, vector<16x32xf32> -> vector<48x32xf32>
    %32 = arith.mulf %20, %22 : vector<1x32xf32>
    %33 = arith.addf %24, %23 : vector<1x32xf32>
    %34 = arith.mulf %21, %33 : vector<1x32xf32>
    %35 = arith.addf %32, %34 : vector<1x32xf32>
    %c0_13 = arith.constant 0 : index
    %c0_14 = arith.constant 0 : index
    %c0_15 = arith.constant 0 : index
    %36 = vector.load %arg4[%c0_13, %c0_14, %c0_15] : memref<12x32x32xf32, #tpu.memory_space<vmem>>, vector<1x32x32xf32>
    %37 = vector.shape_cast %36 : vector<1x32x32xf32> to vector<32x32xf32>
    %38 = vector.extract_strided_slice %37 {offsets = [0, 0], sizes = [16, 32], strides = [1, 1]} : vector<32x32xf32> to vector<16x32xf32>
    %c1_16 = arith.constant 1 : index
    %c0_17 = arith.constant 0 : index
    %c0_18 = arith.constant 0 : index
    %39 = vector.load %arg4[%c1_16, %c0_17, %c0_18] : memref<12x32x32xf32, #tpu.memory_space<vmem>>, vector<1x32x32xf32>
    %40 = vector.shape_cast %39 : vector<1x32x32xf32> to vector<32x32xf32>
    %41 = vector.extract_strided_slice %40 {offsets = [0, 0], sizes = [16, 32], strides = [1, 1]} : vector<32x32xf32> to vector<16x32xf32>
    %c0_19 = arith.constant 0 : index
    %c0_20 = arith.constant 0 : index
    %c0_21 = arith.constant 0 : index
    %42 = vector.load %arg5[%c0_19, %c0_20, %c0_21] : memref<6x8x32xf32, #tpu.memory_space<vmem>>, vector<1x8x32xf32>
    %43 = vector.shape_cast %42 : vector<1x8x32xf32> to vector<8x32xf32>
    %44 = vector.extract_strided_slice %43 {offsets = [0, 0], sizes = [1, 32], strides = [1, 1]} : vector<8x32xf32> to vector<1x32xf32>
    %45 = vector.extract_strided_slice %43 {offsets = [1, 0], sizes = [1, 32], strides = [1, 1]} : vector<8x32xf32> to vector<1x32xf32>
    %46 = vector.extract_strided_slice %43 {offsets = [2, 0], sizes = [1, 32], strides = [1, 1]} : vector<8x32xf32> to vector<1x32xf32>
    %47 = vector.extract_strided_slice %43 {offsets = [3, 0], sizes = [1, 32], strides = [1, 1]} : vector<8x32xf32> to vector<1x32xf32>
    %48 = vector.broadcast %46 : vector<1x32xf32> to vector<16x32xf32>
    %49 = arith.mulf %38, %48 : vector<16x32xf32>
    %50 = vector.broadcast %47 : vector<1x32xf32> to vector<16x32xf32>
    %51 = arith.mulf %41, %50 : vector<16x32xf32>
    %52 = tpu.concatenate %49, %51 in 0 : vector<16x32xf32>, vector<16x32xf32> -> vector<32x32xf32>
    %53 = arith.mulf %44, %46 : vector<1x32xf32>
    %54 = arith.mulf %45, %47 : vector<1x32xf32>
    %55 = arith.addf %53, %54 : vector<1x32xf32>
    %c0_22 = arith.constant 0 : index
    %c0_23 = arith.constant 0 : index
    %c0_24 = arith.constant 0 : index
    %56 = vector.load %arg1[%c0_22, %c0_23, %c0_24] : memref<2x16x16xf32, #tpu.memory_space<vmem>>, vector<1x16x16xf32>
    %57 = vector.shape_cast %56 : vector<1x16x16xf32> to vector<16x16xf32>
    %58 = vector.extract_strided_slice %57 {offsets = [0, 0], sizes = [8, 12], strides = [1, 1]} : vector<16x16xf32> to vector<8x12xf32>
    %cst = arith.constant dense<0.000000e+00> : vector<8x16xf32>
    %59 = tpu.matmul %58, %8, %cst {dimension_numbers = #tpu.dot_dimension_numbers<[1], [0], [0], [1], [0, 0, 1, 1], [], []>} : vector<8x12xf32>, vector<12x16xf32>, vector<8x16xf32> -> vector<8x16xf32>
    %60 = tpu.concatenate %5, %59 in 1 : vector<8x16xf32>, vector<8x16xf32> -> vector<8x32xf32>
    %cst_25 = arith.constant dense<0.000000e+00> : vector<8x32xf32>
    %61 = tpu.matmul %60, %52, %cst_25 {dimension_numbers = #tpu.dot_dimension_numbers<[1], [0], [0], [1], [0, 0, 1, 1], [], []>} : vector<8x32xf32>, vector<32x32xf32>, vector<8x32xf32> -> vector<8x32xf32>
    %c0_26 = arith.constant 0 : index
    %c0_27 = arith.constant 0 : index
    %c0_28 = arith.constant 0 : index
    %62 = vector.load %arg0[%c0_26, %c0_27, %c0_28] : memref<3x16x16xf32, #tpu.memory_space<vmem>>, vector<1x16x16xf32>
    %63 = vector.shape_cast %62 : vector<1x16x16xf32> to vector<16x16xf32>
    %64 = vector.extract_strided_slice %63 {offsets = [0, 0], sizes = [8, 8], strides = [1, 1]} : vector<16x16xf32> to vector<8x8xf32>
    %cst_29 = arith.constant dense<0.000000e+00> : vector<8x32xf32>
    %65 = tpu.matmul %64, %61, %cst_29 {dimension_numbers = #tpu.dot_dimension_numbers<[1], [0], [0], [1], [0, 0, 1, 1], [], []>} : vector<8x8xf32>, vector<8x32xf32>, vector<8x32xf32> -> vector<8x32xf32>
    %66 = vector.broadcast %55 : vector<1x32xf32> to vector<8x32xf32>
    %67 = arith.addf %65, %66 : vector<8x32xf32>
    %cst_30 = arith.constant dense<0.000000e+00> : vector<8xf32>
    %68 = vector.multi_reduction <add>, %67, %cst_30 [1] : vector<8x32xf32> to vector<8xf32>
    %69 = vector.shape_cast %68 : vector<8xf32> to vector<8x1xf32>
    %cst_31 = arith.constant 3.200000e+01 : f32
    %70 = vector.broadcast %cst_31 : f32 to vector<8x1xf32>
    %71 = arith.divf %69, %70 : vector<8x1xf32>
    %72 = arith.mulf %67, %67 : vector<8x32xf32>
    %cst_32 = arith.constant dense<0.000000e+00> : vector<8xf32>
    %73 = vector.multi_reduction <add>, %72, %cst_32 [1] : vector<8x32xf32> to vector<8xf32>
    %74 = vector.shape_cast %73 : vector<8xf32> to vector<8x1xf32>
    %cst_33 = arith.constant 3.200000e+01 : f32
    %75 = vector.broadcast %cst_33 : f32 to vector<8x1xf32>
    %76 = arith.divf %74, %75 : vector<8x1xf32>
    %77 = arith.mulf %71, %71 : vector<8x1xf32>
    %78 = arith.subf %76, %77 : vector<8x1xf32>
    %cst_34 = arith.constant 0.000000e+00 : f32
    %79 = vector.broadcast %cst_34 : f32 to vector<8x1xf32>
    %80 = arith.maximumf %78, %79 : vector<8x1xf32>
    %81 = vector.broadcast %71 : vector<8x1xf32> to vector<8x32xf32>
    %82 = arith.subf %67, %81 : vector<8x32xf32>
    %cst_35 = arith.constant 9.99999974E-6 : f32
    %83 = vector.broadcast %cst_35 : f32 to vector<8x1xf32>
    %84 = arith.addf %80, %83 : vector<8x1xf32>
    %85 = math.rsqrt %84 : vector<8x1xf32>
    %86 = vector.broadcast %85 : vector<8x1xf32> to vector<8x32xf32>
    %87 = arith.mulf %82, %86 : vector<8x32xf32>
    %cst_36 = arith.constant 0.000000e+00 : f32
    %88 = vector.broadcast %cst_36 : f32 to vector<8x32xf32>
    %89 = arith.maximumf %87, %88 : vector<8x32xf32>
    %90 = vector.shape_cast %2 : vector<1x32xi1> to vector<1x32xi1>
    %91 = vector.broadcast %90 : vector<1x32xi1> to vector<8x32xi1>
    %92 = arith.select %91, %89, %87 : vector<8x32xi1>, vector<8x32xf32>
    %cst_37 = arith.constant dense<0.000000e+00> : vector<32xf32>
    %93 = vector.multi_reduction <add>, %92, %cst_37 [0] : vector<8x32xf32> to vector<32xf32>
    %94 = vector.shape_cast %93 : vector<32xf32> to vector<1x32xf32>
    %cst_38 = arith.constant 8.000000e+00 : f32
    %95 = vector.broadcast %cst_38 : f32 to vector<1x32xf32>
    %96 = arith.divf %94, %95 : vector<1x32xf32>
    %97 = arith.mulf %92, %92 : vector<8x32xf32>
    %cst_39 = arith.constant dense<0.000000e+00> : vector<32xf32>
    %98 = vector.multi_reduction <add>, %97, %cst_39 [0] : vector<8x32xf32> to vector<32xf32>
    %99 = vector.shape_cast %98 : vector<32xf32> to vector<1x32xf32>
    %cst_40 = arith.constant 8.000000e+00 : f32
    %100 = vector.broadcast %cst_40 : f32 to vector<1x32xf32>
    %101 = arith.divf %99, %100 : vector<1x32xf32>
    %102 = arith.mulf %96, %96 : vector<1x32xf32>
    %103 = arith.subf %101, %102 : vector<1x32xf32>
    %cst_41 = arith.constant 0.000000e+00 : f32
    %104 = vector.broadcast %cst_41 : f32 to vector<1x32xf32>
    %105 = arith.maximumf %103, %104 : vector<1x32xf32>
    %106 = vector.broadcast %96 : vector<1x32xf32> to vector<8x32xf32>
    %107 = arith.subf %92, %106 : vector<8x32xf32>
    %cst_42 = arith.constant 9.99999974E-6 : f32
    %108 = vector.broadcast %cst_42 : f32 to vector<1x32xf32>
    %109 = arith.addf %105, %108 : vector<1x32xf32>
    %110 = math.rsqrt %109 : vector<1x32xf32>
    %111 = vector.broadcast %110 : vector<1x32xf32> to vector<8x32xf32>
    %112 = arith.mulf %107, %111 : vector<8x32xf32>
    %c0_43 = arith.constant 0 : index
    %c0_44 = arith.constant 0 : index
    %c0_45 = arith.constant 0 : index
    %113 = vector.load %arg2[%c0_43, %c0_44, %c0_45] : memref<2x16x16xf32, #tpu.memory_space<vmem>>, vector<1x16x16xf32>
    %114 = vector.shape_cast %113 : vector<1x16x16xf32> to vector<16x16xf32>
    %115 = vector.extract_strided_slice %114 {offsets = [0, 0], sizes = [12, 8], strides = [1, 1]} : vector<16x16xf32> to vector<12x8xf32>
    %cst_46 = arith.constant dense<0.000000e+00> : vector<12x16xf32>
    %116 = tpu.matmul %115, %5, %cst_46 {dimension_numbers = #tpu.dot_dimension_numbers<[1], [0], [0], [1], [0, 0, 1, 1], [], []>} : vector<12x8xf32>, vector<8x16xf32>, vector<12x16xf32> -> vector<12x16xf32>
    %c1_47 = arith.constant 1 : index
    %c0_48 = arith.constant 0 : index
    %c0_49 = arith.constant 0 : index
    %117 = vector.load %arg1[%c1_47, %c0_48, %c0_49] : memref<2x16x16xf32, #tpu.memory_space<vmem>>, vector<1x16x16xf32>
    %118 = vector.shape_cast %117 : vector<1x16x16xf32> to vector<16x16xf32>
    %119 = vector.extract_strided_slice %118 {offsets = [0, 0], sizes = [12, 10], strides = [1, 1]} : vector<16x16xf32> to vector<12x10xf32>
    %cst_50 = arith.constant dense<0.000000e+00> : vector<12x16xf32>
    %120 = tpu.matmul %119, %11, %cst_50 {dimension_numbers = #tpu.dot_dimension_numbers<[1], [0], [0], [1], [0, 0, 1, 1], [], []>} : vector<12x10xf32>, vector<10x16xf32>, vector<12x16xf32> -> vector<12x16xf32>
    %121 = tpu.concatenate %8, %116, %120 in 1 : vector<12x16xf32>, vector<12x16xf32>, vector<12x16xf32> -> vector<12x48xf32>
    %cst_51 = arith.constant dense<0.000000e+00> : vector<12x32xf32>
    %122 = tpu.matmul %121, %31, %cst_51 {dimension_numbers = #tpu.dot_dimension_numbers<[1], [0], [0], [1], [0, 0, 1, 1], [], []>} : vector<12x48xf32>, vector<48x32xf32>, vector<12x32xf32> -> vector<12x32xf32>
    %c1_52 = arith.constant 1 : index
    %c0_53 = arith.constant 0 : index
    %c0_54 = arith.constant 0 : index
    %123 = vector.load %arg0[%c1_52, %c0_53, %c0_54] : memref<3x16x16xf32, #tpu.memory_space<vmem>>, vector<1x16x16xf32>
    %124 = vector.shape_cast %123 : vector<1x16x16xf32> to vector<16x16xf32>
    %125 = vector.extract_strided_slice %124 {offsets = [0, 0], sizes = [12, 12], strides = [1, 1]} : vector<16x16xf32> to vector<12x12xf32>
    %cst_55 = arith.constant dense<0.000000e+00> : vector<12x32xf32>
    %126 = tpu.matmul %125, %122, %cst_55 {dimension_numbers = #tpu.dot_dimension_numbers<[1], [0], [0], [1], [0, 0, 1, 1], [], []>} : vector<12x12xf32>, vector<12x32xf32>, vector<12x32xf32> -> vector<12x32xf32>
    %127 = vector.broadcast %35 : vector<1x32xf32> to vector<12x32xf32>
    %128 = arith.addf %126, %127 : vector<12x32xf32>
    %cst_56 = arith.constant dense<0.000000e+00> : vector<12xf32>
    %129 = vector.multi_reduction <add>, %128, %cst_56 [1] : vector<12x32xf32> to vector<12xf32>
    %130 = vector.shape_cast %129 : vector<12xf32> to vector<12x1xf32>
    %cst_57 = arith.constant 3.200000e+01 : f32
    %131 = vector.broadcast %cst_57 : f32 to vector<12x1xf32>
    %132 = arith.divf %130, %131 : vector<12x1xf32>
    %133 = arith.mulf %128, %128 : vector<12x32xf32>
    %cst_58 = arith.constant dense<0.000000e+00> : vector<12xf32>
    %134 = vector.multi_reduction <add>, %133, %cst_58 [1] : vector<12x32xf32> to vector<12xf32>
    %135 = vector.shape_cast %134 : vector<12xf32> to vector<12x1xf32>
    %cst_59 = arith.constant 3.200000e+01 : f32
    %136 = vector.broadcast %cst_59 : f32 to vector<12x1xf32>
    %137 = arith.divf %135, %136 : vector<12x1xf32>
    %138 = arith.mulf %132, %132 : vector<12x1xf32>
    %139 = arith.subf %137, %138 : vector<12x1xf32>
    %cst_60 = arith.constant 0.000000e+00 : f32
    %140 = vector.broadcast %cst_60 : f32 to vector<12x1xf32>
    %141 = arith.maximumf %139, %140 : vector<12x1xf32>
    %142 = vector.broadcast %132 : vector<12x1xf32> to vector<12x32xf32>
    %143 = arith.subf %128, %142 : vector<12x32xf32>
    %cst_61 = arith.constant 9.99999974E-6 : f32
    %144 = vector.broadcast %cst_61 : f32 to vector<12x1xf32>
    %145 = arith.addf %141, %144 : vector<12x1xf32>
    %146 = math.rsqrt %145 : vector<12x1xf32>
    %147 = vector.broadcast %146 : vector<12x1xf32> to vector<12x32xf32>
    %148 = arith.mulf %143, %147 : vector<12x32xf32>
    %cst_62 = arith.constant 0.000000e+00 : f32
    %149 = vector.broadcast %cst_62 : f32 to vector<12x32xf32>
    %150 = arith.maximumf %148, %149 : vector<12x32xf32>
    %151 = vector.shape_cast %2 : vector<1x32xi1> to vector<1x32xi1>
    %152 = vector.broadcast %151 : vector<1x32xi1> to vector<12x32xi1>
    %153 = arith.select %152, %150, %148 : vector<12x32xi1>, vector<12x32xf32>
    %cst_63 = arith.constant dense<0.000000e+00> : vector<32xf32>
    %154 = vector.multi_reduction <add>, %153, %cst_63 [0] : vector<12x32xf32> to vector<32xf32>
    %155 = vector.shape_cast %154 : vector<32xf32> to vector<1x32xf32>
    %cst_64 = arith.constant 1.200000e+01 : f32
    %156 = vector.broadcast %cst_64 : f32 to vector<1x32xf32>
    %157 = arith.divf %155, %156 : vector<1x32xf32>
    %158 = arith.mulf %153, %153 : vector<12x32xf32>
    %cst_65 = arith.constant dense<0.000000e+00> : vector<32xf32>
    %159 = vector.multi_reduction <add>, %158, %cst_65 [0] : vector<12x32xf32> to vector<32xf32>
    %160 = vector.shape_cast %159 : vector<32xf32> to vector<1x32xf32>
    %cst_66 = arith.constant 1.200000e+01 : f32
    %161 = vector.broadcast %cst_66 : f32 to vector<1x32xf32>
    %162 = arith.divf %160, %161 : vector<1x32xf32>
    %163 = arith.mulf %157, %157 : vector<1x32xf32>
    %164 = arith.subf %162, %163 : vector<1x32xf32>
    %cst_67 = arith.constant 0.000000e+00 : f32
    %165 = vector.broadcast %cst_67 : f32 to vector<1x32xf32>
    %166 = arith.maximumf %164, %165 : vector<1x32xf32>
    %167 = vector.broadcast %157 : vector<1x32xf32> to vector<12x32xf32>
    %168 = arith.subf %153, %167 : vector<12x32xf32>
    %cst_68 = arith.constant 9.99999974E-6 : f32
    %169 = vector.broadcast %cst_68 : f32 to vector<1x32xf32>
    %170 = arith.addf %166, %169 : vector<1x32xf32>
    %171 = math.rsqrt %170 : vector<1x32xf32>
    %172 = vector.broadcast %171 : vector<1x32xf32> to vector<12x32xf32>
    %173 = arith.mulf %168, %172 : vector<12x32xf32>
    %c6 = arith.constant 6 : index
    %c0_69 = arith.constant 0 : index
    %c0_70 = arith.constant 0 : index
    %174 = vector.load %arg4[%c6, %c0_69, %c0_70] : memref<12x32x32xf32, #tpu.memory_space<vmem>>, vector<1x32x32xf32>
    %175 = vector.shape_cast %174 : vector<1x32x32xf32> to vector<32x32xf32>
    %c7 = arith.constant 7 : index
    %c0_71 = arith.constant 0 : index
    %c0_72 = arith.constant 0 : index
    %176 = vector.load %arg4[%c7, %c0_71, %c0_72] : memref<12x32x32xf32, #tpu.memory_space<vmem>>, vector<1x32x32xf32>
    %177 = vector.shape_cast %176 : vector<1x32x32xf32> to vector<32x32xf32>
    %c3 = arith.constant 3 : index
    %c0_73 = arith.constant 0 : index
    %c0_74 = arith.constant 0 : index
    %178 = vector.load %arg5[%c3, %c0_73, %c0_74] : memref<6x8x32xf32, #tpu.memory_space<vmem>>, vector<1x8x32xf32>
    %179 = vector.shape_cast %178 : vector<1x8x32xf32> to vector<8x32xf32>
    %180 = vector.extract_strided_slice %179 {offsets = [0, 0], sizes = [1, 32], strides = [1, 1]} : vector<8x32xf32> to vector<1x32xf32>
    %181 = vector.extract_strided_slice %179 {offsets = [1, 0], sizes = [1, 32], strides = [1, 1]} : vector<8x32xf32> to vector<1x32xf32>
    %182 = vector.extract_strided_slice %179 {offsets = [2, 0], sizes = [1, 32], strides = [1, 1]} : vector<8x32xf32> to vector<1x32xf32>
    %183 = vector.extract_strided_slice %179 {offsets = [3, 0], sizes = [1, 32], strides = [1, 1]} : vector<8x32xf32> to vector<1x32xf32>
    %184 = vector.broadcast %182 : vector<1x32xf32> to vector<32x32xf32>
    %185 = arith.mulf %175, %184 : vector<32x32xf32>
    %186 = vector.broadcast %183 : vector<1x32xf32> to vector<32x32xf32>
    %187 = arith.mulf %177, %186 : vector<32x32xf32>
    %188 = tpu.concatenate %185, %187 in 0 : vector<32x32xf32>, vector<32x32xf32> -> vector<64x32xf32>
    %189 = arith.mulf %180, %182 : vector<1x32xf32>
    %190 = arith.mulf %181, %183 : vector<1x32xf32>
    %191 = arith.addf %189, %190 : vector<1x32xf32>
    %c0_75 = arith.constant 0 : index
    %c0_76 = arith.constant 0 : index
    %c0_77 = arith.constant 0 : index
    %192 = vector.load %arg1[%c0_75, %c0_76, %c0_77] : memref<2x16x16xf32, #tpu.memory_space<vmem>>, vector<1x16x16xf32>
    %193 = vector.shape_cast %192 : vector<1x16x16xf32> to vector<16x16xf32>
    %194 = vector.extract_strided_slice %193 {offsets = [0, 0], sizes = [8, 12], strides = [1, 1]} : vector<16x16xf32> to vector<8x12xf32>
    %cst_78 = arith.constant dense<0.000000e+00> : vector<8x32xf32>
    %195 = tpu.matmul %194, %173, %cst_78 {dimension_numbers = #tpu.dot_dimension_numbers<[1], [0], [0], [1], [0, 0, 1, 1], [], []>} : vector<8x12xf32>, vector<12x32xf32>, vector<8x32xf32> -> vector<8x32xf32>
    %196 = tpu.concatenate %112, %195 in 1 : vector<8x32xf32>, vector<8x32xf32> -> vector<8x64xf32>
    %cst_79 = arith.constant dense<0.000000e+00> : vector<8x32xf32>
    %197 = tpu.matmul %196, %188, %cst_79 {dimension_numbers = #tpu.dot_dimension_numbers<[1], [0], [0], [1], [0, 0, 1, 1], [], []>} : vector<8x64xf32>, vector<64x32xf32>, vector<8x32xf32> -> vector<8x32xf32>
    %c0_80 = arith.constant 0 : index
    %c0_81 = arith.constant 0 : index
    %c0_82 = arith.constant 0 : index
    %198 = vector.load %arg0[%c0_80, %c0_81, %c0_82] : memref<3x16x16xf32, #tpu.memory_space<vmem>>, vector<1x16x16xf32>
    %199 = vector.shape_cast %198 : vector<1x16x16xf32> to vector<16x16xf32>
    %200 = vector.extract_strided_slice %199 {offsets = [0, 0], sizes = [8, 8], strides = [1, 1]} : vector<16x16xf32> to vector<8x8xf32>
    %cst_83 = arith.constant dense<0.000000e+00> : vector<8x32xf32>
    %201 = tpu.matmul %200, %197, %cst_83 {dimension_numbers = #tpu.dot_dimension_numbers<[1], [0], [0], [1], [0, 0, 1, 1], [], []>} : vector<8x8xf32>, vector<8x32xf32>, vector<8x32xf32> -> vector<8x32xf32>
    %202 = vector.broadcast %191 : vector<1x32xf32> to vector<8x32xf32>
    %203 = arith.addf %201, %202 : vector<8x32xf32>
    %cst_84 = arith.constant dense<0.000000e+00> : vector<8xf32>
    %204 = vector.multi_reduction <add>, %203, %cst_84 [1] : vector<8x32xf32> to vector<8xf32>
    %205 = vector.shape_cast %204 : vector<8xf32> to vector<8x1xf32>
    %cst_85 = arith.constant 3.200000e+01 : f32
    %206 = vector.broadcast %cst_85 : f32 to vector<8x1xf32>
    %207 = arith.divf %205, %206 : vector<8x1xf32>
    %208 = arith.mulf %203, %203 : vector<8x32xf32>
    %cst_86 = arith.constant dense<0.000000e+00> : vector<8xf32>
    %209 = vector.multi_reduction <add>, %208, %cst_86 [1] : vector<8x32xf32> to vector<8xf32>
    %210 = vector.shape_cast %209 : vector<8xf32> to vector<8x1xf32>
    %cst_87 = arith.constant 3.200000e+01 : f32
    %211 = vector.broadcast %cst_87 : f32 to vector<8x1xf32>
    %212 = arith.divf %210, %211 : vector<8x1xf32>
    %213 = arith.mulf %207, %207 : vector<8x1xf32>
    %214 = arith.subf %212, %213 : vector<8x1xf32>
    %cst_88 = arith.constant 0.000000e+00 : f32
    %215 = vector.broadcast %cst_88 : f32 to vector<8x1xf32>
    %216 = arith.maximumf %214, %215 : vector<8x1xf32>
    %217 = vector.broadcast %207 : vector<8x1xf32> to vector<8x32xf32>
    %218 = arith.subf %203, %217 : vector<8x32xf32>
    %cst_89 = arith.constant 9.99999974E-6 : f32
    %219 = vector.broadcast %cst_89 : f32 to vector<8x1xf32>
    %220 = arith.addf %216, %219 : vector<8x1xf32>
    %221 = math.rsqrt %220 : vector<8x1xf32>
    %222 = vector.broadcast %221 : vector<8x1xf32> to vector<8x32xf32>
    %223 = arith.mulf %218, %222 : vector<8x32xf32>
    %cst_90 = arith.constant 0.000000e+00 : f32
    %224 = vector.broadcast %cst_90 : f32 to vector<8x32xf32>
    %225 = arith.maximumf %223, %224 : vector<8x32xf32>
    %226 = vector.shape_cast %2 : vector<1x32xi1> to vector<1x32xi1>
    %227 = vector.broadcast %226 : vector<1x32xi1> to vector<8x32xi1>
    %228 = arith.select %227, %225, %223 : vector<8x32xi1>, vector<8x32xf32>
    %cst_91 = arith.constant dense<0.000000e+00> : vector<32xf32>
    %229 = vector.multi_reduction <add>, %228, %cst_91 [0] : vector<8x32xf32> to vector<32xf32>
    %230 = vector.shape_cast %229 : vector<32xf32> to vector<1x32xf32>
    %cst_92 = arith.constant 8.000000e+00 : f32
    %231 = vector.broadcast %cst_92 : f32 to vector<1x32xf32>
    %232 = arith.divf %230, %231 : vector<1x32xf32>
    %233 = arith.mulf %228, %228 : vector<8x32xf32>
    %cst_93 = arith.constant dense<0.000000e+00> : vector<32xf32>
    %234 = vector.multi_reduction <add>, %233, %cst_93 [0] : vector<8x32xf32> to vector<32xf32>
    %235 = vector.shape_cast %234 : vector<32xf32> to vector<1x32xf32>
    %cst_94 = arith.constant 8.000000e+00 : f32
    %236 = vector.broadcast %cst_94 : f32 to vector<1x32xf32>
    %237 = arith.divf %235, %236 : vector<1x32xf32>
    %238 = arith.mulf %232, %232 : vector<1x32xf32>
    %239 = arith.subf %237, %238 : vector<1x32xf32>
    %cst_95 = arith.constant 0.000000e+00 : f32
    %240 = vector.broadcast %cst_95 : f32 to vector<1x32xf32>
    %241 = arith.maximumf %239, %240 : vector<1x32xf32>
    %242 = vector.broadcast %232 : vector<1x32xf32> to vector<8x32xf32>
    %243 = arith.subf %228, %242 : vector<8x32xf32>
    %cst_96 = arith.constant 9.99999974E-6 : f32
    %244 = vector.broadcast %cst_96 : f32 to vector<1x32xf32>
    %245 = arith.addf %241, %244 : vector<1x32xf32>
    %246 = math.rsqrt %245 : vector<1x32xf32>
    %247 = vector.broadcast %246 : vector<1x32xf32> to vector<8x32xf32>
    %248 = arith.mulf %243, %247 : vector<8x32xf32>
    %cst_97 = arith.constant dense<0.000000e+00> : vector<32xf32>
    %249 = vector.multi_reduction <add>, %248, %cst_97 [0] : vector<8x32xf32> to vector<32xf32>
    %250 = vector.shape_cast %249 : vector<32xf32> to vector<1x32xf32>
    %cst_98 = arith.constant 8.000000e+00 : f32
    %251 = vector.broadcast %cst_98 : f32 to vector<1x32xf32>
    %252 = arith.divf %250, %251 : vector<1x32xf32>
    %c0_99 = arith.constant 0 : index
    %c0_100 = arith.constant 0 : index
    %253 = vector.load %arg6[%c0_99, %c0_100] : memref<32x128xf32, #tpu.memory_space<vmem>>, vector<32x128xf32>
    %cst_101 = arith.constant dense<0.000000e+00> : vector<1x128xf32>
    %254 = tpu.matmul %252, %253, %cst_101 {dimension_numbers = #tpu.dot_dimension_numbers<[1], [0], [0], [1], [0, 0, 1, 1], [], []>} : vector<1x32xf32>, vector<32x128xf32>, vector<1x128xf32> -> vector<1x128xf32>
    %c0_102 = arith.constant 0 : index
    %c0_103 = arith.constant 0 : index
    %255 = vector.load %arg7[%c0_102, %c0_103] : memref<1x128xf32, #tpu.memory_space<vmem>>, vector<1x128xf32>
    %256 = arith.addf %254, %255 : vector<1x128xf32>
    %c0_104 = arith.constant 0 : index
    %c0_105 = arith.constant 0 : index
    %257 = vector.load %arg8[%c0_104, %c0_105] : memref<1x128xf32, #tpu.memory_space<vmem>>, vector<1x128xf32>
    tpu.vector_store %arg8[%c0_104, %c0_105], %256 {strides = array<i32>} : memref<1x128xf32, #tpu.memory_space<vmem>>, vector<1x128xf32>,
    return
  }
}

</mosaic_0001>

<bundles_post_ra>
// kernel: forward.1
= control target key start
LH: loop header
LB: loop body
LE: loop exit
PB: predicated region body
PF: predicated region fallthrough
CT: control target
= control target key end

     0   :  { %13 = vsyncpa [#allocation3], 0  ;;  %s1957_s0 = inlined_call_operand.hbm [shape: f32[3,16,16], index: 0, kind: input, shape index: {}]   ;;  %s1958_s1 = inlined_call_operand.hbm [shape: f32[2,16,16], index: 1, kind: input, shape index: {}]   ;;  %s1959_s2 = inlined_call_operand.hbm [shape: f32[2,16,16], index: 2, kind: input, shape index: {}]   ;;  %s1960_s3 = inlined_call_operand.hbm [shape: f32[3,16,16], index: 3, kind: input, shape index: {}]   ;;  %s1961_s4 = inlined_call_operand.hbm [shape: f32[12,32,32], index: 4, kind: input, shape index: {}]   ;;  %s1962_s5 = inlined_call_operand.hbm [shape: f32[6,8,32], index: 5, kind: input, shape index: {}]   ;;  %s1963_s6 = inlined_call_operand.hbm [shape: f32[32,128], index: 6, kind: input, shape index: {}]   ;;  %s1964_s7 = inlined_call_operand.vmem [shape: f32[1,128], index: 7, kind: input, shape index: {}]   ;;  %s1965_s8 = inlined_call_operand.hbm [shape: f32[1,128], index: 8, kind: output, shape index: {}]  }
   0x1   :  { %14 = vsyncpa [#allocation6], 0 }
   0x2   :  { %15 = vsyncpa [#allocation9], 0 }
   0x3   :  { %16 = vsyncpa [#allocation12], 0 }
   0x4   :  { %17 = vsyncpa [#allocation4], 0  ;;  %s1693_s27 = smov [#allocation5]   ;;  %s1694_s29 = smov [#allocation8]  }
   0x5   :  { %s35_s28 = sshll.u32 %s1693_s27, 4  ;;  %s59_s30 = sshll.u32 %s1694_s29, 4  ;;  %s36_s28 = int_to_ptr.vmem [resolvable:$true] %s35_s28  ;;  %s60_s30 = int_to_ptr.vmem [resolvable:$true] %s59_s30 }
   0x6   :  { %s1531_s9 = scalar_lea.vmem %s36_s28, 512  ;;  %p1536_p1 = scmp.lt.s32.totalorder %s36_s28, %s36_s28 }
   0x7   :  { %p1532_p0 = scmp.ne.s32.totalorder %s36_s28, %s1531_s9  ;;  %p1537_p2 = scmp.lt.s32.totalorder %s1531_s9, %s1531_s9 }
   0x9   :  { %p1538_p3 = por %p1537_p2, %p1536_p1 }
   0xb   :  { %p1539_p4 = pnand %p1538_p3, %p1532_p0 }
   0xd   :  { %1542 = shalt.err (!%p1539_p4)
}
   0xe   :  { %s1695_s10 = smov 128   ;;  %s1696_s11 = smov 8  }
   0xf   :  { %41 = dma.hbm_to_vmem [thread:$0]  %s1958_s1, 512, %s36_s28, [#allocation6], %s1695_s10, %s1695_s10, %s1696_s11  }
  0x10   :  { %s1551_s14 = scalar_lea.vmem %s60_s30, 768  ;;  %p1556_p6 = scmp.lt.s32.totalorder %s60_s30, %s60_s30 }
  0x11   :  { %p1552_p5 = scmp.ne.s32.totalorder %s60_s30, %s1551_s14  ;;  %p1557_p7 = scmp.lt.s32.totalorder %s1551_s14, %s1551_s14 }
  0x13   :  { %p1558_p8 = por %p1557_p7, %p1556_p6 }
  0x15   :  { %p1559_p9 = pnand %p1558_p8, %p1552_p5 }
  0x17   :  { %1562 = shalt.err (!%p1559_p9)
}
  0x18   :  { %65 = dma.hbm_to_vmem [thread:$0]  %s1960_s3, 768, %s60_s30, [#allocation9], %s1695_s10, %s1695_s10, %s1696_s11  }
  0x19   :  { %s1697_s17 = smov [#allocation11]   ;;  %s1698_s19 = smov [#allocation2]  }
  0x1a   :  { %s83_s18 = sshll.u32 %s1697_s17, 4  ;;  %s23_s20 = sshll.u32 %s1698_s19, 4  ;;  %s84_s18 = int_to_ptr.vmem [resolvable:$true] %s83_s18  ;;  %s24_s20 = int_to_ptr.vmem [resolvable:$true] %s23_s20 }
  0x1b   :  { %s1571_s1 = scalar_lea.vmem %s84_s18, 768  ;;  %p1576_p11 = scmp.lt.s32.totalorder %s84_s18, %s84_s18 }
  0x1c   :  { %p1572_p10 = scmp.ne.s32.totalorder %s84_s18, %s1571_s1  ;;  %p1577_p12 = scmp.lt.s32.totalorder %s1571_s1, %s1571_s1 }
  0x1e   :  { %p1578_p13 = por %p1577_p12, %p1576_p11 }
  0x20   :  { %p1579_p0 = pnand %p1578_p13, %p1572_p10 }
  0x22   :  { %1582 = shalt.err (!%p1579_p0)
}
  0x23   :  { %89 = dma.hbm_to_vmem [thread:$0]  %s1962_s5, 768, %s84_s18, [#allocation12], %s1695_s10, %s1695_s10, %s1696_s11  }
  0x24   :  { %s1591_s3 = scalar_lea.vmem %s24_s20, 768  ;;  %p1596_p2 = scmp.lt.s32.totalorder %s24_s20, %s24_s20 }
  0x25   :  { %p1592_p1 = scmp.ne.s32.totalorder %s24_s20, %s1591_s3  ;;  %p1597_p3 = scmp.lt.s32.totalorder %s1591_s3, %s1591_s3 }
  0x27   :  { %p1598_p4 = por %p1597_p3, %p1596_p2 }
  0x29   :  { %p1599_p5 = pnand %p1598_p4, %p1592_p1 }
  0x2b   :  { %1602 = shalt.err (!%p1599_p5)
}
  0x2c   :  { %29 = dma.hbm_to_vmem [thread:$0]  %s1957_s0, 768, %s24_s20, [#allocation3], %s1695_s10, %s1695_s10, %s1696_s11  }
  0x2d   :  { %s1699_s25 = smov [#allocation7]   ;;  %s1700_s27 = smov [#allocation10]  }
  0x2e   :  { %s47_s26 = sshll.u32 %s1699_s25, 4  ;;  %s71_s28 = sshll.u32 %s1700_s27, 4  ;;  %s48_s26 = int_to_ptr.vmem [resolvable:$true] %s47_s26  ;;  %s72_s28 = int_to_ptr.vmem [resolvable:$true] %s71_s28 }
  0x2f   :  { %s1611_s5 = scalar_lea.vmem %s48_s26, 512  ;;  %p1616_p7 = scmp.lt.s32.totalorder %s48_s26, %s48_s26 }
  0x30   :  { %p1612_p6 = scmp.ne.s32.totalorder %s48_s26, %s1611_s5  ;;  %p1617_p8 = scmp.lt.s32.totalorder %s1611_s5, %s1611_s5 }
  0x32   :  { %p1618_p9 = por %p1617_p8, %p1616_p7 }
  0x34   :  { %p1619_p10 = pnand %p1618_p9, %p1612_p6 }
  0x36   :  { %1622 = shalt.err (!%p1619_p10)
}
  0x37   :  { %53 = dma.hbm_to_vmem [thread:$0]  %s1959_s2, 512, %s48_s26, [#allocation6], %s1695_s10, %s1695_s10, %s1696_s11  }
  0x38   :  { %s1631_s0 = scalar_lea.vmem %s72_s28, 6144  ;;  %p1636_p12 = scmp.lt.s32.totalorder %s72_s28, %s72_s28 }
  0x39   :  { %p1632_p11 = scmp.ne.s32.totalorder %s72_s28, %s1631_s0  ;;  %p1637_p13 = scmp.lt.s32.totalorder %s1631_s0, %s1631_s0 }
  0x3b   :  { %p1638_p0 = por %p1637_p13, %p1636_p12 }
  0x3d   :  { %p1639_p1 = pnand %p1638_p0, %p1632_p11 }
  0x3f   :  { %1642 = shalt.err (!%p1639_p1)
}
  0x40   :  { %77 = dma.hbm_to_vmem [thread:$0]  %s1961_s4, 6144, %s72_s28, [#allocation9], %s1695_s10, %s1695_s10, %s1696_s11  }
  0x41   :  { %s1701_s13 = smov [#allocation13]  }
  0x42   :  { %s95_s14 = sshll.u32 %s1701_s13, 4  ;;  %s96_s14 = int_to_ptr.vmem [resolvable:$true] %s95_s14 }
  0x43   :  { %s1651_s15 = scalar_lea.vmem %s96_s14, 512  ;;  %p1656_p3 = scmp.lt.s32.totalorder %s96_s14, %s96_s14 }
  0x44   :  { %p1652_p2 = scmp.ne.s32.totalorder %s96_s14, %s1651_s15  ;;  %p1657_p4 = scmp.lt.s32.totalorder %s1651_s15, %s1651_s15 }
  0x46   :  { %p1658_p5 = por %p1657_p4, %p1656_p3 }
  0x48   :  { %p1659_p6 = pnand %p1658_p5, %p1652_p2 }
  0x4a   :  { %1662 = shalt.err (!%p1659_p6)
}
  0x4b   :  { %101 = dma.hbm_to_vmem [thread:$0]  %s1963_s6, 512, %s96_s14, [#allocation12], %s1695_s10, %s1695_s10, %s1696_s11  }
  0x4c   :  { %1683 = dma.done.wait [#allocation3], 768  }
  0x4d   :  { %1684 = vsyncadd [#allocation3], 4294966528 }
  0x4e   :  { %1685 = dma.done.wait [#allocation6], 1024  }
  0x4f   :  { %1686 = vsyncadd [#allocation6], 4294966272 }
  0x50   :  { %1687 = dma.done.wait [#allocation9], 6912  }
  0x51   :  { %1688 = vsyncadd [#allocation9], 4294960384 }
  0x52   :  { %1689 = dma.done.wait [#allocation12], 1280  }
  0x53   :  { %1690 = vsyncadd [#allocation12], 4294966016  ;;  %v1702_v0 = vmov 0.0   ;;  %vm1703_vm0 = vmmov 0   ;;  %vm207_vm1 = vcmask 1043456   ;;  %v1800_v1 = vld [vmem:[#allocation8 + $0x18] sm:$0xff]  ;;  %v125_v4 = vlaneseq }
  0x54   :  { %1396 = vmatprep.subr.mxu0 %v1702_v0  ;;  %1400 = vmatprep.mubr.msk.f32.mxu0 %vm1703_vm0, %v1702_v0  ;;  %v1802_v2 = vld [vmem:[#allocation8 + $0x10] sm:$0xff]  ;;  %v1806_v3 = vld [vmem:[#allocation5] sm:$0xff]  ;;  %vm203_vm2 = vcmask 97280   ;;  %v180_v9 = vld [vmem:[#allocation10 + $0x28] sm:$0xff]  ;;  %s1704_s4 = smov 16   ;;  %vm285_vm3 = vcmask 130048  }
  0x55   :  { %1403 = vmatprep.subr.mxu1 %v1702_v0  ;;  %1411 = vmatprep.mubr.msk.f32.mxu1 %vm1703_vm0, %v1702_v0  ;;  %v1816_v5 = vshrl.u32 %v125_v4, 7  ;;  %v1818_v6 = vld [vmem:[#allocation11] sm:$0xff]  ;;  %v177_v13 = vld [vmem:[#allocation10 + $0x8] sm:$0xff]  ;;  %v128_v21 = vld [vmem:[#allocation8] sm:$0xff]  ;;  %vm287_vm4 = vcmask 261120   ;;  %vm579_vm5 = vcmask 1041408  }
  0x56   :  { %1397 = vmatpush3.msk.msra.mxu0 %vm207_vm1, %v1800_v1  ;;  %v179_v10 = vld [vmem:[#allocation10 + $0x20] sm:$0xff]  ;;  %v134_v24 = vld [vmem:[#allocation8 + $0x28] sm:$0xff]  ;;  %v133_v25 = vld [vmem:[#allocation8 + $0x20] sm:$0xff]  ;;  %vm572_vm6 = vcmask 80896   ;;  %vm366_vm7 = vcmask 64512   ;;  %s1705_s6 = smov 32  }
  0x57   :  { %1398 = vmatprep.subr.mxu0 %v1702_v0  ;;  %v1821_v7 = vsub.s32 3, %v1816_v5  ;;  %v1824_v8 = vsub.s32 2, %v1816_v5  ;;  %v176_v17 = vld [vmem:[#allocation10] sm:$0xff]  ;;  %v571_v27 = vld [vmem:[#allocation5 + $0x18] sm:$0xff]  ;;  %v486_v30 = vld [vmem:[#allocation7] sm:$0xff]  ;;  %v151_v36 = vsub.s32 4, %v1816_v5 }
  0x58   :  { %1399 = vmatpush3.msra.mxu0 %v1802_v2  ;;  %v570_v26 = vld [vmem:[#allocation5 + $0x10] sm:$0xff]  ;;  %v487_v32 = vld [vmem:[#allocation7 + $0x8] sm:$0xff]  ;;  %v140_v33 = vld [vmem:[#allocation10 + $0xa8] sm:$0xff]  ;;  %vm678_vm8 = vcmask 392192   ;;  %vm854_vm9 = vcmask 257024   ;;  %vm1034_vm11 = vcmask 523264  }
  0x59   :  { %1401 = vmatmul.mubr.msk.f32.vlgmr.msra.gmra.mxu0 %vm203_vm2, %v1806_v3  ;;  %1414 = vmatprep.subr.mxu0 %v1702_v0  ;;  %v191_v11 = vrot.slane %v1818_v6, %v1821_v7  ;;  %v185_v12 = vrot.slane %v1818_v6, %v1824_v8  ;;  %v1836_v28 = vld [vmem:[#allocation2] sm:$0xff]  ;;  %v1842_v34 = vld [vmem:[#allocation11 + $0x10] sm:$0xff]  ;;  %v137_v44 = vld [vmem:[#allocation10 + $0x88] sm:$0xff]  ;;  %s1706_s17 = smov [#allocation14]  }
  0x5a   :  { %1416 = vmatprep.mubr.msk.f32.mxu0 %vm1703_vm0, %v1702_v0  ;;  %v139_v35 = vld [vmem:[#allocation10 + $0xa0] sm:$0xff]  ;;  %v158_v37 = vrot.slane %v1842_v34, %v1821_v7  ;;  %v152_v38 = vrot.slane %v1842_v34, %v151_v36  ;;  %v146_v43 = vrot.slane %v1842_v34, %v1824_v8  ;;  %v761_v62 = vld [vmem:[#allocation2 + $0x10] sm:$0xff]  ;;  %s1317_s18 = sshll.u32 %s1706_s17, 4  ;;  %s1318_s18 = int_to_ptr.vmem [resolvable:$true] %s1317_s18 }
  0x5b   :  { %v193_v14 = vmul.f32 %v191_v11, %v180_v9  ;;  %v192_v15 = vmul.f32 %v191_v11, %v179_v10  ;;  %v187_v16 = vmul.f32 %v185_v12, %v177_v13  ;;  %v186_v18 = vmul.f32 %v185_v12, %v176_v17  ;;  %v136_v46 = vld [vmem:[#allocation10 + $0x80] sm:$0xff]  ;;  %v762_v9 = vld [vmem:[#allocation2 + $0x18] sm:$0xff]  ;;  %s1663_s19 = scalar_lea.vmem %s1318_s18, 16  ;;  %s1667_s20 = scalar_lea.vmem %s1318_s18, 32 }
  0x5c   :  { %v160_v39 = vmul.f32 %v158_v37, %v140_v33  ;;  %v159_v40 = vmul.f32 %v158_v37, %v139_v35  ;;  %v154_v41 = vmul.f32 %v152_v38, %v140_v33  ;;  %v153_v42 = vmul.f32 %v152_v38, %v139_v35  ;;  %p1664_p7 = scmp.ne.s32.totalorder %s1318_s18, %s1663_s19  ;;  %p1668_p8 = scmp.lt.s32.totalorder %s1318_s18, %s1318_s18 }
  0x5d   :  { %1404 = vmatpush3.msra.mxu1 %v193_v14  ;;  %v148_v45 = vmul.f32 %v146_v43, %v137_v44  ;;  %v147_v47 = vmul.f32 %v146_v43, %v136_v46  ;;  %v195_v12 = vrot.slane %v1818_v6, 2  ;;  %v162_v13 = vrot.slane %v1842_v34, 2  ;;  %p1669_p9 = scmp.lt.s32.totalorder %s1667_s20, %s1663_s19 }
  0x5e   :  { %1405 = vmatprep.subr.mxu1 %v1702_v0 }
  0x5f   :  { %1406 = vmatpush3.msra.mxu1 %v192_v15  ;;  %v197_v15 = vmul.f32 %v195_v12, %v1818_v6  ;;  %p1670_p10 = por %p1669_p9, %p1668_p8 }
  0x60   :  { %1407 = vmatprep.subr.mxu1 %v1702_v0 }
  0x61   :  { %1408 = vmatpush3.msra.mxu1 %v187_v16  ;;  %v164_v16 = vmul.f32 %v162_v13, %v1842_v34  ;;  %p1671_p11 = pnand %p1670_p10, %p1664_p7 }
  0x62   :  { %1409 = vmatprep.subr.mxu1 %v1702_v0 }
  0x63   :  { %1410 = vmatpush3.msra.mxu1 %v186_v18  ;;  %v199_v18 = vrot.slane %v197_v15, 1 }
  0x64   :  { %1424 = vmatprep.subr.msk.mxu1 %vm579_vm5, %v134_v24 }
 0x119   :  { %v277_v19 = vpop.f32.mrf.mxu0 }
 0x11a   :  { %282 = vrot.lane.b32.xlu0 %v277_v19, %s1704_s4 }
 0x11b   :  { %v1402_v20 = vpop.f32.mrf.mxu0 }
 0x11c   :  { %v1878_v20 = vsub.s32 0, %v1816_v5 }
 0x18c   :  { %v283_v22 = vpop.permute.xlu0 %282 }
 0x18d   :  { %v286_v23 = vsel %vm285_vm3, %v128_v21, %v283_v22 }
 0x18e   :  { %1412 = vmatmul.mubr.msk.f32.vlgmr.msra.gmra.mxu1 %vm287_vm4, %v286_v23 }
 0x18f   :  { %1425 = vmatpush3.msk.msra.mxu1 %vm579_vm5, %v134_v24  ;;  %1428 = vmatprep.mubr.msk.f32.mxu1 %vm572_vm6, %v570_v26 }
 0x190   :  { %1426 = vmatprep.subr.mxu1 %v133_v25 }
 0x191   :  { %1427 = vmatpush3.msra.mxu1 %v133_v25 }
 0x192   :  { %1429 = vmatmul.mubr.msk.f32.vlgmr.msra.gmra.mxu1 %vm572_vm6, %v571_v27 }
 0x193   :  { %1450 = vmatprep.mubr.msk.f32.mxu1 %vm203_vm2, %v761_v62 }
 0x24e   :  { %v357_v29 = vpop.f32.mrf.mxu1 }
 0x24f   :  { %1415 = vmatpush3.msra.mxu0 %v357_v29 }
 0x250   :  { %v1413_v31 = vpop.f32.mrf.mxu1  ;;  %1417 = vmatmul.mubr.msk.f32.vlgmr.msra.gmra.mxu0 %vm366_vm7, %v1836_v28  ;;  %1419 = vmatprep.subr.mxu0 %v128_v21 }
 0x251   :  { %1420 = vmatpush3.msra.mxu0 %v128_v21  ;;  %1421 = vmatprep.mubr.msk.f32.mxu0 %vm366_vm7, %v486_v30  ;;  %v201_v21 = vadd.f32 %v199_v18, %v197_v15 }
 0x252   :  { %1431 = vmatprep.subr.mxu0 %v160_v39  ;;  %v1430_v50 = vpop.f32.mrf.mxu1 }
 0x253   :  { %v365_v24 = vrot.slane %v201_v21, %v1878_v20 }
 0x254   :  { %1422 = vmatmul.mubr.msk.f32.vlgmr.msra.gmra.mxu0 %vm366_vm7, %v487_v32  ;;  %v649_v53 = vpop.f32.mrf.mxu1 }
 0x255   :  { %1432 = vmatpush3.msra.mxu0 %v160_v39 }
 0x256   :  { %1433 = vmatprep.subr.mxu0 %v159_v40 }
 0x257   :  { %1434 = vmatpush3.msra.mxu0 %v159_v40 }
 0x258   :  { %1435 = vmatprep.subr.mxu0 %v154_v41 }
 0x259   :  { %1436 = vmatpush3.msra.mxu0 %v154_v41 }
 0x25a   :  { %1437 = vmatprep.subr.mxu0 %v153_v42 }
 0x25b   :  { %1438 = vmatpush3.msra.mxu0 %v153_v42 }
 0x25c   :  { %1439 = vmatprep.subr.mxu0 %v148_v45 }
 0x25d   :  { %1440 = vmatpush3.msra.mxu0 %v148_v45 }
 0x25e   :  { %1441 = vmatprep.subr.mxu0 %v147_v47 }
 0x25f   :  { %1442 = vmatpush3.msra.mxu0 %v147_v47 }
 0x260   :  { %1479 = vmatprep.subr.mxu0 %v1702_v0 }
 0x310   :  { %v436_v48 = vpop.f32.mrf.mxu0 }
 0x311   :  { %v1883_v29 = vadd.f32 %v436_v48, %v365_v24 }
 0x312   :  { %v1418_v49 = vpop.f32.mrf.mxu0 }
 0x313   :  { %v440_v35 = vsel %vm287_vm4, %v1883_v29, 0.0 }
 0x314   :  { %v1423_v51 = vpop.f32.mrf.mxu0 }
 0x315   :  { %662 = vrot.lane.b32.xlu1 %v1423_v51, %s1704_s4 }
 0x316   :  { %v560_v52 = vpop.f32.mrf.mxu0 }
 0x317   :  { %660 = vrot.lane.b32.xlu0 %v560_v52, %s1704_s4 }
 0x319   :  { %668 = vrot.lane.b32.xlu1 %v649_v53, %s1705_s6  ;;  %v1894_v53 = vand.u32 127, %v125_v4 }
 0x31b   :  { %670 = vrot.lane.b32.xlu0 %v1430_v50, %s1705_s6  ;;  %vm127_vm10 = vcmp.ge.s32.totalorder %v1894_v53, 16 }
 0x387   :  { %v663_v54 = vpop.permute.xlu1 %662 }
 0x388   :  { %v675_v59 = vsel %vm285_vm3, %v1800_v1, %v663_v54  ;;  %v165_v1 = vrot.slane %v1842_v34, 7 }
 0x389   :  { %v661_v55 = vpop.permute.xlu0 %660 }
 0x38a   :  { %v674_v56 = vsel %vm285_vm3, %v1802_v2, %v661_v55  ;;  %v167_v10 = vadd.f32 %v165_v1, %v1842_v34 }
 0x38b   :  { %v669_v57 = vpop.permute.xlu1 %668 }
 0x38c   :  { %v676_v58 = vsel %vm287_vm4, %v674_v56, %v669_v57  ;;  %v169_v11 = vrot.slane %v167_v10, 3 }
 0x38d   :  { %v671_v60 = vpop.permute.xlu0 %670  ;;  %1443 = vmatprep.mubr.msk.f32.mxu0 %vm678_vm8, %v676_v58 }
 0x38e   :  { %v677_v61 = vsel %vm287_vm4, %v675_v59, %v671_v60  ;;  %v171_v14 = vmul.f32 %v169_v11, %v1842_v34  ;;  %v445_v34 = vmul.f32 %v1883_v29, %v1883_v29 }
 0x38f   :  { %1444 = vmatmul.mubr.msk.f32.vlgmr.msra.gmra.mxu0 %vm678_vm8, %v677_v61 }
 0x390   :  { %1481 = vmatprep.mubr.msk.f32.mxu0 %vm1703_vm0, %v1702_v0  ;;  %v173_v17 = vrot.slane %v171_v14, 1  ;;  %v446_v36 = vsel %vm287_vm4, %v445_v34, 0.0 }
 0x392   :  { %v175_v19 = vadd.f32 %v173_v17, %v164_v16 }
 0x394   :  { %v766_v22 = vrot.slane %v175_v19, %v1878_v20 }
 0x44f   :  { %v1445_v63 = vpop.f32.mrf.mxu0 }
 0x450   :  { %1446 = vmatprep.subr.msk.mxu1 %vm207_vm1, %v1445_v63 }
 0x451   :  { %v751_v2 = vpop.f32.mrf.mxu0  ;;  %1447 = vmatpush3.msk.msra.mxu1 %vm207_vm1, %v1445_v63 }
 0x452   :  { %1448 = vmatprep.subr.mxu1 %v751_v2 }
 0x453   :  { %1449 = vmatpush3.msra.mxu1 %v751_v2 }
 0x454   :  { %1451 = vmatmul.mubr.msk.f32.vlgmr.msra.gmra.mxu1 %vm203_vm2, %v762_v9  ;;  %1453 = vmatprep.subr.mxu1 %v1702_v0 }
 0x455   :  { %1457 = vmatprep.mubr.msk.f32.mxu1 %vm1703_vm0, %v1702_v0 }
 0x514   :  { %v1452_v23 = vpop.f32.mrf.mxu1 }
 0x515   :  { %v848_v25 = vadd.f32 %v1452_v23, %v766_v22 }
 0x516   :  { %v842_v26 = vpop.f32.mrf.mxu1 }
 0x517   :  { %v843_v27 = vadd.f32 %v842_v26, %v766_v22  ;;  %v855_v6 = vsel %vm854_vm9, %v848_v25, 0.0  ;;  %v861_v5 = vmul.f32 %v848_v25, %v848_v25 }
 0x518   :  { %856 = vadd.xlane.f32.xlu0 %v855_v6 }
 0x519   :  { %v851_v30 = vsel %vm287_vm4, %v843_v27, 0.0  ;;  %v860_v31 = vmul.f32 %v843_v27, %v843_v27  ;;  %v865_v33 = vsel %vm854_vm9, %v861_v5, 0.0 }
 0x51a   :  { %852 = vadd.xlane.f32.xlu1 %v851_v30 }
 0x51b   :  { %v862_v32 = vsel %vm287_vm4, %v860_v31, 0.0 }
 0x51c   :  { %863 = vadd.xlane.f32.xlu0 %v862_v32 }
 0x51e   :  { %866 = vadd.xlane.f32.xlu1 %v865_v33 }
 0x520   :  { %441 = vadd.xlane.f32.xlu0 %v440_v35 }
 0x522   :  { %447 = vadd.xlane.f32.xlu1 %v446_v36 }
 0x5a1   :  { %v857_v37 = vpop.xlane.xlu0 %856 }
 0x5a2   :  { %v859_v39 = vmul.f32 0.03125, %v857_v37 }
 0x5a3   :  { %v853_v38 = vpop.xlane.xlu1 %852 }
 0x5a4   :  { %v858_v40 = vmul.f32 0.03125, %v853_v38  ;;  %v871_v45 = vmul.f32 %v859_v39, %v859_v39  ;;  %v877_v56 = vsub.f32 %v848_v25, %v859_v39  ;;  %v1912_v38 = vld [vmem:[#allocation11 + $0x18] sm:$0xff] }
 0x5a5   :  { %v864_v41 = vpop.xlane.xlu0 %863  ;;  %v943_v39 = vrot.slane %v1912_v38, %v1821_v7 }
 0x5a6   :  { %v870_v42 = vmul.f32 %v858_v40, %v858_v40  ;;  %v868_v43 = vmul.f32 0.03125, %v864_v41  ;;  %v876_v54 = vsub.f32 %v843_v27, %v858_v40  ;;  %v929_v40 = vld [vmem:[#allocation10 + $0xf8] sm:$0xff]  ;;  %v928_v41 = vld [vmem:[#allocation10 + $0xf0] sm:$0xff] }
 0x5a7   :  { %v867_v44 = vpop.xlane.xlu1 %866 }
 0x5a8   :  { %v872_v46 = vsub.f32 %v868_v43, %v870_v42  ;;  %v869_v47 = vmul.f32 0.03125, %v867_v44  ;;  %v927_v42 = vld [vmem:[#allocation10 + $0xe8] sm:$0xff]  ;;  %v947_v43 = vmul.f32 %v943_v39, %v929_v40  ;;  %v946_v44 = vmul.f32 %v943_v39, %v928_v41 }
 0x5a9   :  { %v949_v41 = vrot.slane %v1912_v38, 2 }
 0x5aa   :  { %v874_v48 = vmax.f32 %v872_v46, 0.0  ;;  %v873_v49 = vsub.f32 %v869_v47, %v871_v45  ;;  %v926_v45 = vld [vmem:[#allocation10 + $0xe0] sm:$0xff]  ;;  %v935_v46 = vrot.slane %v1912_v38, %v1824_v8  ;;  %v924_v47 = vld [vmem:[#allocation10 + $0xd8] sm:$0xff] }
 0x5ac   :  { %v878_v50 = vadd.f32 1e-05, %v874_v48  ;;  %v875_v51 = vmax.f32 %v873_v49, 0.0  ;;  %v944_v48 = vmul.f32 %v943_v39, %v926_v45  ;;  %v923_v49 = vld [vmem:[#allocation10 + $0xd0] sm:$0xff]  ;;  %v939_v7 = vmul.f32 %v935_v46, %v924_v47 }
 0x5ae   :  { %1509 = vrsqrt.f32 %v878_v50  ;;  %v879_v52 = vadd.f32 1e-05, %v875_v51  ;;  %v922_v50 = vld [vmem:[#allocation10 + $0xc8] sm:$0xff]  ;;  %v938_v51 = vmul.f32 %v935_v46, %v923_v49 }
 0x5af   :  { %v937_v8 = vmul.f32 %v935_v46, %v922_v50  ;;  %v1234_v50 = vld [vmem:[#allocation13 + $0x10] sm:$0xff] }
 0x5b0   :  { %1511 = vrsqrt.f32 %v879_v52  ;;  %v921_v52 = vld [vmem:[#allocation10 + $0xc0] sm:$0xff] }
 0x5bb   :  { %v1510_v55 = vpop.eup %1509 }
 0x5bc   :  { %v882_v57 = vmul.f32 %v1510_v55, %v876_v54  ;;  %v936_v54 = vmul.f32 %v935_v46, %v921_v52 }
 0x5bd   :  { %v1512_v58 = vpop.eup %1511 }
 0x5be   :  { %v884_v59 = vmax.f32 %v882_v57, 0.0  ;;  %v883_v60 = vmul.f32 %v1512_v58, %v877_v56  ;;  %v442_v56 = vpop.xlane.xlu0 %441 }
 0x5bf   :  { %v444_v58 = vmul.f32 0.03125, %v442_v56 }
 0x5c0   :  { %v885_v61 = vmax.f32 %v883_v60, 0.0  ;;  %v886_v62 = vsel %vm127_vm10, %v884_v59, %v882_v57  ;;  %v448_v59 = vpop.xlane.xlu1 %447 }
 0x5c1   :  { %v899_v63 = vmul.f32 %v886_v62, %v886_v62  ;;  %v888_v4 = vsel %vm287_vm4, %v886_v62, 0.0 }
 0x5c2   :  { %v887_v2 = vsel %vm127_vm10, %v885_v61, %v883_v60  ;;  %v450_v60 = vmul.f32 %v444_v58, %v444_v58  ;;  %v449_v61 = vmul.f32 0.03125, %v448_v59 }
 0x5c3   :  { %v889_v9 = vsel %vm854_vm9, %v887_v2, 0.0  ;;  %v900_v1 = vmul.f32 %v887_v2, %v887_v2  ;;  %v901_v11 = vsel %vm287_vm4, %v899_v63, 0.0 }
 0x5c4   :  { %v890_v10 = vadd.f32 %v889_v9, %v888_v4  ;;  %v453_v9 = vsub.f32 %v1883_v29, %v444_v58 }
 0x5c5   :  { %v902_v12 = vsel %vm854_vm9, %v900_v1, 0.0 }
 0x5c6   :  { %v891_v13 = vrot.slane %v890_v10, 4  ;;  %v903_v14 = vadd.f32 %v902_v12, %v901_v11 }
 0x5c8   :  { %v892_v15 = vadd.f32 %v891_v13, %v890_v10  ;;  %v904_v16 = vrot.slane %v903_v14, 4 }
 0x5ca   :  { %v893_v17 = vrot.slane %v892_v15, 2  ;;  %v905_v18 = vadd.f32 %v904_v16, %v903_v14 }
 0x5cc   :  { %v894_v19 = vadd.f32 %v893_v17, %v892_v15  ;;  %v906_v21 = vrot.slane %v905_v18, 2 }
 0x5ce   :  { %v895_v22 = vrot.slane %v894_v19, 1  ;;  %v907_v23 = vadd.f32 %v906_v21, %v905_v18 }
 0x5d0   :  { %v896_v24 = vadd.f32 %v895_v22, %v894_v19  ;;  %v908_v25 = vrot.slane %v907_v23, 1 }
 0x5d2   :  { %v898_v26 = vmul.f32 0.083333336, %v896_v24  ;;  %v909_v27 = vadd.f32 %v908_v25, %v907_v23 }
 0x5d4   :  { %v910_v6 = vmul.f32 0.083333336, %v909_v27  ;;  %v911_v30 = vmul.f32 %v898_v26, %v898_v26  ;;  %v915_v33 = vsub.f32 %v887_v2, %v898_v26  ;;  %v914_v36 = vsub.f32 %v886_v62, %v898_v26 }
 0x5d5   :  { %v451_v62 = vsub.f32 %v449_v61, %v450_v60 }
 0x5d6   :  { %v912_v31 = vsub.f32 %v910_v6, %v911_v30 }
 0x5d7   :  { %v452_v63 = vmax.f32 %v451_v62, 0.0 }
 0x5d8   :  { %v913_v5 = vmax.f32 %v912_v31, 0.0 }
 0x5d9   :  { %v454_v2 = vadd.f32 1e-05, %v452_v63 }
 0x5da   :  { %v916_v32 = vadd.f32 1e-05, %v913_v5 }
 0x5dc   :  { %1513 = vrsqrt.f32 %v916_v32 }
 0x5dd   :  { %1515 = vrsqrt.f32 %v454_v2 }
 0x5e9   :  { %v1514_v34 = vpop.eup %1513 }
 0x5ea   :  { %v919_v35 = vmul.f32 %v1514_v34, %v915_v33  ;;  %v918_v37 = vmul.f32 %v1514_v34, %v914_v36  ;;  %v1516_v4 = vpop.eup %1515 }
 0x5eb   :  { %v456_v1 = vmul.f32 %v1516_v4, %v453_v9 }
 0x5ec   :  { %1454 = vmatpush3.msk.msra.mxu1 %vm207_vm1, %v919_v35 }
 0x5ed   :  { %1455 = vmatprep.subr.mxu1 %v1702_v0  ;;  %v457_v10 = vmax.f32 %v456_v1, 0.0 }
 0x5ee   :  { %1456 = vmatpush3.msra.mxu1 %v918_v37 }
 0x5ef   :  { %1458 = vmatmul.mubr.msk.f32.vlgmr.msra.gmra.mxu1 %vm203_vm2, %v1806_v3  ;;  %1460 = vmatprep.subr.mxu1 %v1702_v0  ;;  %v945_v3 = vmul.f32 %v943_v39, %v927_v42  ;;  %v460_v11 = vsel %vm127_vm10, %v457_v10, %v456_v1  ;;  %v951_v42 = vmul.f32 %v949_v41, %v1912_v38  ;;  %v1233_v38 = vld [vmem:[#allocation13 + $0x8] sm:$0xff] }
 0x5f0   :  { %1476 = vmatprep.mubr.msk.f32.mxu1 %vm1703_vm0, %v1702_v0  ;;  %1461 = vmatpush3.msra.mxu1 %v947_v43  ;;  %v461_v12 = vsel %vm287_vm4, %v460_v11, 0.0  ;;  %v470_v13 = vmul.f32 %v460_v11, %v460_v11 }
 0x5f1   :  { %1462 = vmatprep.subr.mxu1 %v1702_v0  ;;  %v462_v14 = vrot.slane %v461_v12, 4  ;;  %v953_v43 = vrot.slane %v951_v42, 1 }
 0x5f2   :  { %1463 = vmatpush3.msra.mxu1 %v946_v44  ;;  %v471_v15 = vsel %vm287_vm4, %v470_v13, 0.0 }
 0x5f3   :  { %1464 = vmatprep.subr.mxu1 %v1702_v0  ;;  %v463_v16 = vadd.f32 %v462_v14, %v461_v12  ;;  %v472_v17 = vrot.slane %v471_v15, 4  ;;  %v955_v44 = vadd.f32 %v953_v43, %v951_v42 }
 0x5f4   :  { %1465 = vmatpush3.msra.mxu1 %v945_v3 }
 0x5f5   :  { %1466 = vmatprep.subr.mxu1 %v1702_v0  ;;  %v464_v18 = vrot.slane %v463_v16, 2  ;;  %v473_v19 = vadd.f32 %v472_v17, %v471_v15  ;;  %v1111_v45 = vrot.slane %v955_v44, %v1878_v20  ;;  %v1232_v20 = vld [vmem:[#allocation13] sm:$0xff] }
 0x5f6   :  { %1467 = vmatpush3.msra.mxu1 %v944_v48 }
 0x5f7   :  { %1468 = vmatprep.subr.mxu1 %v1702_v0  ;;  %v465_v21 = vadd.f32 %v464_v18, %v463_v16  ;;  %v474_v22 = vrot.slane %v473_v19, 2 }
 0x5f8   :  { %1469 = vmatpush3.msra.mxu1 %v939_v7  ;;  %v1235_v7 = vld [vmem:[#allocation13 + $0x18] sm:$0xff] }
 0x5f9   :  { %1470 = vmatprep.subr.mxu1 %v1702_v0  ;;  %v466_v23 = vrot.slane %v465_v21, 1  ;;  %v475_v24 = vadd.f32 %v474_v22, %v473_v19 }
 0x5fa   :  { %1471 = vmatpush3.msra.mxu1 %v938_v51 }
 0x5fb   :  { %1472 = vmatprep.subr.mxu1 %v1702_v0  ;;  %v467_v29 = vadd.f32 %v466_v23, %v465_v21  ;;  %v476_v25 = vrot.slane %v475_v24, 1 }
 0x5fc   :  { %1473 = vmatpush3.msra.mxu1 %v937_v8 }
 0x5fd   :  { %1474 = vmatprep.subr.mxu1 %v1702_v0  ;;  %v469_v26 = vmul.f32 0.125, %v467_v29  ;;  %v477_v27 = vadd.f32 %v476_v25, %v475_v24 }
 0x5fe   :  { %1475 = vmatpush3.msra.mxu1 %v936_v54 }
 0x5ff   :  { %v478_v6 = vmul.f32 0.125, %v477_v27  ;;  %v479_v30 = vmul.f32 %v469_v26, %v469_v26  ;;  %v482_v34 = vsub.f32 %v460_v11, %v469_v26 }
 0x601   :  { %v480_v31 = vsub.f32 %v478_v6, %v479_v30 }
 0x603   :  { %v481_v5 = vmax.f32 %v480_v31, 0.0 }
 0x605   :  { %v483_v32 = vadd.f32 1e-05, %v481_v5 }
 0x607   :  { %1517 = vrsqrt.f32 %v483_v32 }
 0x614   :  { %v1518_v33 = vpop.eup %1517 }
 0x615   :  { %v485_v35 = vmul.f32 %v1518_v33, %v482_v34 }
 0x6af   :  { %v1025_v55 = vpop.f32.mrf.mxu1 }
 0x6b0   :  { %1030 = vrot.lane.b32.xlu0 %v1025_v55, %s1705_s6 }
 0x6b1   :  { %v1459_v57 = vpop.f32.mrf.mxu1 }
 0x722   :  { %v1031_v36 = vpop.permute.xlu0 %1030 }
 0x723   :  { %v1033_v37 = vsel %vm287_vm4, %v485_v35, %v1031_v36  ;;  %v1236_v36 = vld [vmem:[%s1964_s7] sm:$0x1] }
 0x724   :  { %1477 = vmatmul.mubr.msk.f32.vlgmr.msra.gmra.mxu1 %vm1034_vm11, %v1033_v37 }
 0x7e4   :  { %v1104_v39 = vpop.f32.mrf.mxu1 }
 0x7e5   :  { %1480 = vmatpush3.msra.mxu0 %v1104_v39 }
 0x7e6   :  { %v1478_v40 = vpop.f32.mrf.mxu1  ;;  %1482 = vmatmul.mubr.msk.f32.vlgmr.msra.gmra.mxu0 %vm366_vm7, %v1836_v28  ;;  %1484 = vmatprep.subr.mxu0 %v1702_v0 }
 0x7e7   :  { %1492 = vmatprep.mubr.msk.f32.mxu0 %vm1703_vm0, %v1702_v0  ;;  %1485 = vmatpush3.msra.mxu0 %v1235_v7 }
 0x7e8   :  { %1486 = vmatprep.subr.mxu0 %v1702_v0 }
 0x7e9   :  { %1487 = vmatpush3.msra.mxu0 %v1234_v50 }
 0x7ea   :  { %1488 = vmatprep.subr.mxu0 %v1702_v0 }
 0x7eb   :  { %1489 = vmatpush3.msra.mxu0 %v1233_v38 }
 0x7ec   :  { %1490 = vmatprep.subr.mxu0 %v1702_v0 }
 0x7ed   :  { %1491 = vmatpush3.msra.mxu0 %v1232_v20 }
 0x8a6   :  { %v1178_v46 = vpop.f32.mrf.mxu0 }
 0x8a7   :  { %v1179_v3 = vadd.f32 %v1178_v46, %v1111_v45 }
 0x8a8   :  { %v1483_v47 = vpop.f32.mrf.mxu0 }
 0x8a9   :  { %v1182_v48 = vsel %vm287_vm4, %v1179_v3, 0.0  ;;  %v1186_v49 = vmul.f32 %v1179_v3, %v1179_v3 }
 0x8aa   :  { %1183 = vadd.xlane.f32.xlu1 %v1182_v48 }
 0x8ab   :  { %v1187_v28 = vsel %vm287_vm4, %v1186_v49, 0.0 }
 0x8ae   :  { %1188 = vadd.xlane.f32.xlu1 %v1187_v28 }
 0x933   :  { %v1184_v51 = vpop.xlane.xlu1 %1183 }
 0x934   :  { %v1185_v8 = vmul.f32 0.03125, %v1184_v51 }
 0x936   :  { %v1191_v54 = vmul.f32 %v1185_v8, %v1185_v8  ;;  %v1194_v59 = vsub.f32 %v1179_v3, %v1185_v8 }
 0x937   :  { %v1189_v52 = vpop.xlane.xlu1 %1188 }
 0x938   :  { %v1190_v55 = vmul.f32 0.03125, %v1189_v52 }
 0x93a   :  { %v1192_v56 = vsub.f32 %v1190_v55, %v1191_v54 }
 0x93c   :  { %v1193_v57 = vmax.f32 %v1192_v56, 0.0 }
 0x93e   :  { %v1195_v58 = vadd.f32 1e-05, %v1193_v57 }
 0x940   :  { %1519 = vrsqrt.f32 %v1195_v58 }
 0x94d   :  { %v1520_v60 = vpop.eup %1519 }
 0x94e   :  { %v1197_v61 = vmul.f32 %v1520_v60, %v1194_v59 }
 0x950   :  { %v1198_v62 = vmax.f32 %v1197_v61, 0.0 }
 0x952   :  { %v1199_v63 = vsel %vm127_vm10, %v1198_v62, %v1197_v61 }
 0x953   :  { %v1200_v2 = vsel %vm287_vm4, %v1199_v63, 0.0  ;;  %v1208_v0 = vmul.f32 %v1199_v63, %v1199_v63 }
 0x954   :  { %v1201_v4 = vrot.slane %v1200_v2, 4 }
 0x955   :  { %v1209_v9 = vsel %vm287_vm4, %v1208_v0, 0.0 }
 0x956   :  { %v1202_v1 = vadd.f32 %v1201_v4, %v1200_v2  ;;  %v1210_v10 = vrot.slane %v1209_v9, 4 }
 0x958   :  { %v1203_v11 = vrot.slane %v1202_v1, 2  ;;  %v1211_v12 = vadd.f32 %v1210_v10, %v1209_v9 }
 0x95a   :  { %v1212_v13 = vrot.slane %v1211_v12, 2  ;;  %v1204_v14 = vadd.f32 %v1203_v11, %v1202_v1 }
 0x95c   :  { %v1213_v15 = vadd.f32 %v1212_v13, %v1211_v12  ;;  %v1205_v16 = vrot.slane %v1204_v14, 1 }
 0x95e   :  { %v1214_v17 = vrot.slane %v1213_v15, 1  ;;  %v1206_v18 = vadd.f32 %v1205_v16, %v1204_v14 }
 0x960   :  { %v1207_v19 = vmul.f32 0.125, %v1206_v18  ;;  %v1215_v21 = vadd.f32 %v1214_v17, %v1213_v15 }
 0x962   :  { %v1216_v53 = vmul.f32 0.125, %v1215_v21  ;;  %v1217_v22 = vmul.f32 %v1207_v19, %v1207_v19  ;;  %v1220_v25 = vsub.f32 %v1199_v63, %v1207_v19 }
 0x964   :  { %v1218_v23 = vsub.f32 %v1216_v53, %v1217_v22 }
 0x966   :  { %v1219_v24 = vmax.f32 %v1218_v23, 0.0 }
 0x968   :  { %v1221_v29 = vadd.f32 1e-05, %v1219_v24 }
 0x96a   :  { %1521 = vrsqrt.f32 %v1221_v29 }
 0x977   :  { %v1522_v26 = vpop.eup %1521 }
 0x978   :  { %v1223_v27 = vmul.f32 %v1522_v26, %v1220_v25 }
 0x97a   :  { %v1224_v6 = vsel %vm287_vm4, %v1223_v27, 0.0 }
 0x97b   :  { %v1225_v30 = vrot.slane %v1224_v6, 4 }
 0x97d   :  { %v1226_v31 = vadd.f32 %v1225_v30, %v1224_v6 }
 0x97f   :  { %v1227_v5 = vrot.slane %v1226_v31, 2 }
 0x981   :  { %v1228_v32 = vadd.f32 %v1227_v5, %v1226_v31 }
 0x983   :  { %v1229_v33 = vrot.slane %v1228_v32, 1 }
 0x985   :  { %v1230_v34 = vadd.f32 %v1229_v33, %v1228_v32 }
 0x987   :  { %v1231_v35 = vmul.f32 0.125, %v1230_v34 }
 0x989   :  { %1493 = vmatmul.mubr.msk.f32.vlgmr.msra.gmra.mxu0 %vm287_vm4, %v1231_v35 }
 0xa49   :  { %v1306_v37 = vpop.f32.mrf.mxu0 }
 0xa4a   :  { %v1307_v39 = vadd.f32 %v1306_v37, %v1236_v36 }
 0xa4b   :  { %v1494_v40 = vpop.f32.mrf.mxu0 }
 0xa4c   :  { %1310 = vst [vmem:[#allocation14] sm:$0x1] %v1307_v39 }
 0xa4d   :  { %1674 = shalt.err (!%p1671_p11)
}
 0xa4e   :  { %1320 = dma.vmem_to_hbm [thread:$0]  %s1318_s18, 16, %s1965_s8, [#allocation4]  }
 0xa4f   :  { %1691 = dma.done.wait [#allocation4], 16  }
 0xa50   :  { %1692 = vsyncadd [#allocation4], 4294967280 }
 0xa51   :  { %1324 = vsyncpa [#allocation3], 1 }
 0xa52   :  { %1325 = vsyncpa [#allocation6], 1 }
 0xa53   :  { %1326 = vsyncpa [#allocation9], 1 }
 0xa54   :  { %1327 = vsyncpa [#allocation12], 1 }
 0xa55   :  { %1328 = vsyncpa [#allocation4], 1 }

</bundles_post_ra>
